<compile_context>
chip_gen: v6e
topology: v6e:2x2x1
jax: 0.10.0
libtpu: 0.0.40
codegen_flags: <defaults>
</compile_context>

<pallas_src>
import jax
import jax.numpy as jnp
import numpy as np
from jax.experimental import pallas as pl
from jax.experimental.pallas import tpu as pltpu


def janet_kernel(x_ref, h_ref, c_ref, wx_ref, wh_ref, b_ref,
                 h_out_ref, c_out_ref):
    H = h_out_ref.shape[-1]

    # bf16 operands for the MXU; f32 accumulation.
    x_bf = x_ref[...].astype(jnp.bfloat16)
    h_bf = h_ref[...].astype(jnp.bfloat16)

    # Fused, lane-dense gate projection: (B, 2H) f32 accumulator.
    #   gates = [x_t, h_prev] @ [W_f | W_c] + [b_f | b_c]
    # expressed as two accumulating dots (no concat, no extra data movement).
    gates = jnp.dot(x_bf, wx_ref[...], preferred_element_type=jnp.float32)
    gates = gates + jnp.dot(h_bf, wh_ref[...],
                            preferred_element_type=jnp.float32)
    gates = gates + b_ref[...]                       # (1, 2H) broadcast, once

    # Static slices of the fused accumulator.
    f_t = jax.nn.sigmoid(gates[:, :H])               # EUP
    c_tilde = jnp.tanh(gates[:, H:])                 # EUP

    # c_t = f*c_prev + (1-f)*c~  ==  c~ + f*(c_prev - c~)
    c_prev = c_ref[...]
    c_t = c_tilde + f_t * (c_prev - c_tilde)
    h_out_ref[...] = jnp.tanh(c_t)
    c_out_ref[...] = c_t


def janet_cell(x_t, h_prev, c_prev, W_f, b_f, W_c, b_c):
    B, I = x_t.shape
    H = h_prev.shape[1]

    # One-time parameter prep (would be done once per model, not per step):
    # fuse the two gates along the output axis (lane-dense 2H output) and
    # split the contraction axis so the kernel never concatenates activations.
    W = jnp.concatenate([W_f, W_c], axis=1)                      # (I+H, 2H)
    W_x = W[:I, :].astype(jnp.bfloat16)                          # (I,   2H)
    W_h = W[I:, :].astype(jnp.bfloat16)                          # (H,   2H)
    b = jnp.concatenate([b_f, b_c], axis=1).astype(jnp.float32)  # (1, 2H)

    vmem = pl.BlockSpec(memory_space=pltpu.MemorySpace.VMEM)
    h_t, c_t = pl.pallas_call(
        janet_kernel,
        out_shape=(
            jax.ShapeDtypeStruct((B, H), jnp.float32),
            jax.ShapeDtypeStruct((B, H), jnp.float32),
        ),
        in_specs=[vmem] * 6,
        out_specs=(vmem, vmem),
    )(x_t, h_prev, c_prev, W_x, W_h, b)
    return h_t, c_t


def janet_ref_f32(x_t, h_prev, c_prev, W_f, b_f, W_c, b_c):
    """Pure-f32 reference (PyTorch semantics)."""
    combined = jnp.concatenate([x_t, h_prev], axis=1)
    f_t = jax.nn.sigmoid(combined @ W_f + b_f)
    c_tilde = jnp.tanh(combined @ W_c + b_c)
    c_t = f_t * c_prev + (1.0 - f_t) * c_tilde
    return jnp.tanh(c_t), c_t


def janet_ref_bf16(x_t, h_prev, c_prev, W_f, b_f, W_c, b_c):
    """Reference matching the kernel's bf16-operand / f32-accumulate matmul."""
    cb = jnp.concatenate([x_t, h_prev], axis=1).astype(jnp.bfloat16)
    Wf = W_f.astype(jnp.bfloat16)
    Wc = W_c.astype(jnp.bfloat16)
    f_t = jax.nn.sigmoid(
        jnp.dot(cb, Wf, preferred_element_type=jnp.float32) + b_f)
    c_tilde = jnp.tanh(
        jnp.dot(cb, Wc, preferred_element_type=jnp.float32) + b_c)
    c_t = f_t * c_prev + (1.0 - f_t) * c_tilde
    return jnp.tanh(c_t), c_t


if __name__ == "__main__":
    B, I, H = 8, 16, 32  # batch, input_size, hidden_size

    key = jax.random.PRNGKey(0)
    kx, kh, kc, kwf, kbf, kwc, kbc = jax.random.split(key, 7)

    x_t = jax.random.normal(kx, (B, I), dtype=jnp.float32)
    h_prev = jax.random.normal(kh, (B, H), dtype=jnp.float32)
    c_prev = jax.random.normal(kc, (B, H), dtype=jnp.float32)

    # nn.Linear-style init: U(-1/sqrt(fan_in), 1/sqrt(fan_in)); weights stored
    # transposed vs PyTorch so the math is  combined @ W + b.
    fan_in = I + H
    bound = 1.0 / np.sqrt(fan_in)
    W_f = jax.random.uniform(kwf, (fan_in, H), jnp.float32, -bound, bound)
    b_f = jax.random.uniform(kbf, (1, H), jnp.float32, -bound, bound)
    W_c = jax.random.uniform(kwc, (fan_in, H), jnp.float32, -bound, bound)
    b_c = jax.random.uniform(kbc, (1, H), jnp.float32, -bound, bound)

    h_t, c_t = jax.jit(janet_cell)(x_t, h_prev, c_prev, W_f, b_f, W_c, b_c)
    jax.block_until_ready((h_t, c_t))

    # Tight check vs. a reference using the same bf16-operand matmul.
    h_bf, c_bf = janet_ref_bf16(x_t, h_prev, c_prev, W_f, b_f, W_c, b_c)
    np.testing.assert_allclose(np.asarray(h_t), np.asarray(h_bf),
                               rtol=1e-3, atol=1e-3)
    np.testing.assert_allclose(np.asarray(c_t), np.asarray(c_bf),
                               rtol=1e-3, atol=1e-3)

    # Looser check vs. the pure-f32 (PyTorch-semantics) reference.
    h_f32, c_f32 = janet_ref_f32(x_t, h_prev, c_prev, W_f, b_f, W_c, b_c)
    np.testing.assert_allclose(np.asarray(h_t), np.asarray(h_f32),
                               rtol=3e-2, atol=3e-2)
    np.testing.assert_allclose(np.asarray(c_t), np.asarray(c_f32),
                               rtol=3e-2, atol=3e-2)

    print("KERNEL_OK")
</pallas_src>

<mosaic_0001>
module attributes {stable_mosaic.version = 11 : i64} {
  func.func @janet_kernel(%arg0: memref<8x16xf32, #tpu.memory_space<vmem>>, %arg1: memref<8x32xf32, #tpu.memory_space<vmem>>, %arg2: memref<8x32xf32, #tpu.memory_space<vmem>>, %arg3: memref<16x64xbf16, #tpu.memory_space<vmem>>, %arg4: memref<32x64xbf16, #tpu.memory_space<vmem>>, %arg5: memref<1x64xf32, #tpu.memory_space<vmem>>, %arg6: memref<8x32xf32, #tpu.memory_space<vmem>>, %arg7: memref<8x32xf32, #tpu.memory_space<vmem>>) attributes {dimension_semantics = [], scalar_prefetch = 0 : i64, scratch_operands = 0 : i64, tpu.core_type = #tpu.core_type<tc>} {
    %c0 = arith.constant 0 : index
    %c0_0 = arith.constant 0 : index
    %0 = vector.load %arg0[%c0, %c0_0] : memref<8x16xf32, #tpu.memory_space<vmem>>, vector<8x16xf32>
    %1 = arith.truncf %0 : vector<8x16xf32> to vector<8x16xbf16>
    %c0_1 = arith.constant 0 : index
    %c0_2 = arith.constant 0 : index
    %2 = vector.load %arg1[%c0_1, %c0_2] : memref<8x32xf32, #tpu.memory_space<vmem>>, vector<8x32xf32>
    %3 = arith.truncf %2 : vector<8x32xf32> to vector<8x32xbf16>
    %c0_3 = arith.constant 0 : index
    %c0_4 = arith.constant 0 : index
    %4 = vector.load %arg3[%c0_3, %c0_4] : memref<16x64xbf16, #tpu.memory_space<vmem>>, vector<16x64xbf16>
    %cst = arith.constant dense<0.000000e+00> : vector<8x64xf32>
    %5 = tpu.matmul %1, %4, %cst {dimension_numbers = #tpu.dot_dimension_numbers<[1], [0], [0], [1], [0, 0, 1, 1], [], []>} : vector<8x16xbf16>, vector<16x64xbf16>, vector<8x64xf32> -> vector<8x64xf32>
    %c0_5 = arith.constant 0 : index
    %c0_6 = arith.constant 0 : index
    %6 = vector.load %arg4[%c0_5, %c0_6] : memref<32x64xbf16, #tpu.memory_space<vmem>>, vector<32x64xbf16>
    %cst_7 = arith.constant dense<0.000000e+00> : vector<8x64xf32>
    %7 = tpu.matmul %3, %6, %cst_7 {dimension_numbers = #tpu.dot_dimension_numbers<[1], [0], [0], [1], [0, 0, 1, 1], [], []>} : vector<8x32xbf16>, vector<32x64xbf16>, vector<8x64xf32> -> vector<8x64xf32>
    %8 = arith.addf %5, %7 : vector<8x64xf32>
    %c0_8 = arith.constant 0 : index
    %c0_9 = arith.constant 0 : index
    %9 = vector.load %arg5[%c0_8, %c0_9] : memref<1x64xf32, #tpu.memory_space<vmem>>, vector<1x64xf32>
    %10 = vector.broadcast %9 : vector<1x64xf32> to vector<8x64xf32>
    %11 = arith.addf %8, %10 : vector<8x64xf32>
    %12 = vector.extract_strided_slice %11 {offsets = [0, 0], sizes = [8, 32], strides = [1, 1]} : vector<8x64xf32> to vector<8x32xf32>
    %13 = arith.negf %12 : vector<8x32xf32>
    %14 = math.exp %13 : vector<8x32xf32>
    %cst_10 = arith.constant 1.000000e+00 : f32
    %15 = vector.broadcast %cst_10 : f32 to vector<8x32xf32>
    %16 = arith.addf %15, %14 : vector<8x32xf32>
    %17 = arith.divf %15, %16 : vector<8x32xf32>
    %18 = vector.extract_strided_slice %11 {offsets = [0, 32], sizes = [8, 32], strides = [1, 1]} : vector<8x64xf32> to vector<8x32xf32>
    %19 = math.tanh %18 : vector<8x32xf32>
    %c0_11 = arith.constant 0 : index
    %c0_12 = arith.constant 0 : index
    %20 = vector.load %arg2[%c0_11, %c0_12] : memref<8x32xf32, #tpu.memory_space<vmem>>, vector<8x32xf32>
    %21 = arith.subf %20, %19 : vector<8x32xf32>
    %22 = arith.mulf %17, %21 : vector<8x32xf32>
    %23 = arith.addf %19, %22 : vector<8x32xf32>
    %24 = math.tanh %23 : vector<8x32xf32>
    %c0_13 = arith.constant 0 : index
    %c0_14 = arith.constant 0 : index
    %25 = vector.load %arg6[%c0_13, %c0_14] : memref<8x32xf32, #tpu.memory_space<vmem>>, vector<8x32xf32>
    tpu.vector_store %arg6[%c0_13, %c0_14], %24 {strides = array<i32>} : memref<8x32xf32, #tpu.memory_space<vmem>>, vector<8x32xf32>,
    %c0_15 = arith.constant 0 : index
    %c0_16 = arith.constant 0 : index
    %26 = vector.load %arg7[%c0_15, %c0_16] : memref<8x32xf32, #tpu.memory_space<vmem>>, vector<8x32xf32>
    tpu.vector_store %arg7[%c0_15, %c0_16], %23 {strides = array<i32>} : memref<8x32xf32, #tpu.memory_space<vmem>>, vector<8x32xf32>,
    return
  }
}

</mosaic_0001>

<bundles_post_ra>
// kernel: janet_cell.1
= control target key start
LH: loop header
LB: loop body
LE: loop exit
PB: predicated region body
PF: predicated region fallthrough
CT: control target
= control target key end

     0   :  { %13 = vsyncpa [#allocation3], 0  ;;  %v297_v1 = vmov 0.0   ;;  %vm298_vm0 = vmmov 0   ;;  %vm100_vm1 = vcmask 130048   ;;  %s373_s0 = inlined_call_operand.vmem [shape: f32[8,16], index: 0, kind: input, shape index: {}]   ;;  %s374_s1 = inlined_call_operand.vmem [shape: f32[8,32], index: 1, kind: input, shape index: {}]   ;;  %s375_s2 = inlined_call_operand.vmem [shape: f32[8,32], index: 2, kind: input, shape index: {}]   ;;  %s376_s3 = inlined_call_operand.vmem [shape: bf16[16,64], index: 3, kind: input, shape index: {}]   ;;  %s377_s4 = inlined_call_operand.vmem [shape: bf16[32,64], index: 4, kind: input, shape index: {}]   ;;  %s378_s5 = inlined_call_operand.vmem [shape: f32[1,64], index: 5, kind: input, shape index: {}]   ;;  %s379_s6 = inlined_call_operand.hbm [shape: f32[8,32], index: 6, kind: output, shape index: {0}]   ;;  %s380_s7 = inlined_call_operand.hbm [shape: f32[8,32], index: 7, kind: output, shape index: {1}]  }
   0x1   :  { %v242_v0 = vld [vmem:[%s377_s4 + $0x8] sm:$0xff]   ;;  %222 = vmatprep.subr.bf16.mxu0 %v297_v1  ;;  %230 = vmatprep.subr.bf16.mxu1 %v297_v1  ;;  %v243_v2 = vld [vmem:[%s376_s3] sm:$0xff]  }
   0x2   :  { %223 = vmatpush3.bf16.msra.mxu0 %v242_v0  ;;  %232 = vmatprep.mubr.msk.bf16.mxu1 %vm298_vm0, %v297_v1  ;;  %v28_v3 = vld [vmem:[%s373_s0] sm:$0xff] }
   0x3   :  { %231 = vmatpush3.bf16.msra.mxu1 %v243_v2  ;;  %224 = vmatprep.subr.bf16.mxu0 %v297_v1  ;;  %v29_v4 = vpack.c.bf16 %v28_v3, %v28_v3  ;;  %v244_v5 = vld [vmem:[%s377_s4] sm:$0xff]  }
   0x4   :  { %v30_v6 = vld [vmem:[%s374_s1] sm:$0xff] }
   0x5   :  { %14 = vsyncpa [#allocation5], 0  ;;  %226 = vmatprep.mubr.msk.bf16.mxu0 %vm298_vm0, %v297_v1  ;;  %v31_v7 = vpack.c.bf16 %v30_v6, %v30_v6  ;;  %vm50_vm2 = vcmask 261120   ;;  %v215_v11 = vld [vmem:[%s378_s5] ss:$0 sm:$0xff]  ;;  %s299_s1 = smov 96  }
   0x6   :  { %233 = vmatmul.mubr.msk.bf16.vlgmr.msra.gmra.mxu1 %vm100_vm1, %v29_v4  ;;  %225 = vmatpush3.bf16.msra.mxu0 %v244_v5  ;;  %v159_v23 = vld [vmem:[%s375_s2] sm:$0xff]  ;;  %s300_s5 = smov 32   ;;  %s301_s12 = smov [#allocation2]  }
   0x7   :  { %s188_s13 = sshll.u32 %s301_s12, 4  ;;  %s302_s14 = smov [#allocation4]   ;;  %s189_s13 = int_to_ptr.vmem [resolvable:$true] %s188_s13 }
   0x8   :  { %s198_s15 = sshll.u32 %s302_s14, 4  ;;  %s253_s2 = scalar_lea.vmem %s189_s13, 128  ;;  %s199_s15 = int_to_ptr.vmem [resolvable:$true] %s198_s15 }
   0x9   :  { %227 = vmatmul.mubr.msk.bf16.vlgmr.msra.gmra.mxu0 %vm50_vm2, %v31_v7  ;;  %p254_p0 = scmp.ne.s32.totalorder %s189_s13, %s253_s2  ;;  %p258_p1 = scmp.lt.s32.totalorder %s189_s13, %s189_s13 }
   0xa   :  { %p259_p2 = scmp.lt.s32.totalorder %s253_s2, %s253_s2 }
   0xc   :  { %p260_p3 = por %p259_p2, %p258_p1 }
   0xe   :  { %p261_p4 = pnand %p260_p3, %p254_p0 }
  0xc6   :  { %v138_v8 = vpop.f32.mrf.mxu1 }
  0xc8   :  { %v234_v9 = vpop.f32.mrf.mxu1 }
  0xc9   :  { %v88_v10 = vpop.f32.mrf.mxu0 }
  0xca   :  { %v139_v12 = vadd.f32 %v138_v8, %v88_v10  ;;  %v141_v13 = vpop.f32.mrf.mxu1 }
  0xcb   :  { %v228_v14 = vpop.f32.mrf.mxu0 }
  0xcc   :  { %v151_v15 = vadd.f32 %v215_v11, %v139_v12  ;;  %v235_v16 = vpop.f32.mrf.mxu1 }
  0xcd   :  { %v91_v17 = vpop.f32.mrf.mxu0 }
  0xce   :  { %245 = vtanh.f32 %v151_v15  ;;  %v216_v20 = vmul.f32 -1.442695, %v151_v15 }
  0xcf   :  { %v229_v18 = vpop.f32.mrf.mxu0 }
  0xd0   :  { %247 = vpow2.f32 %v216_v20 }
  0xdb   :  { %v246_v19 = vpop.eup %245 }
  0xdc   :  { %161 = vrot.lane.b32.xlu0 %v246_v19, %s299_s1 }
  0xdd   :  { %v248_v21 = vpop.eup %247 }
  0xde   :  { %v155_v22 = vadd.f32 1.0, %v248_v21 }
  0xe0   :  { %249 = vrcp.f32 %v155_v22 }
  0xed   :  { %v250_v26 = vpop.eup %249 }
 0x14e   :  { %v162_v24 = vpop.permute.xlu0 %161 }
 0x14f   :  { %v164_v25 = vsub.f32 %v159_v23, %v162_v24 }
 0x151   :  { %v165_v27 = vmul.f32 %v250_v26, %v164_v25 }
 0x153   :  { %167 = vrot.lane.b32.xlu0 %v165_v27, %s300_s5 }
 0x1c5   :  { %v168_v28 = vpop.permute.xlu0 %167 }
 0x1c6   :  { %v170_v29 = vadd.f32 %v246_v19, %v168_v28 }
 0x1c8   :  { %251 = vtanh.f32 %v170_v29 }
 0x1d5   :  { %v252_v30 = vpop.eup %251 }
 0x1d6   :  { %173 = vrot.lane.b32.xlu1 %v252_v30, %s299_s1 }
 0x1da   :  { %178 = vrot.lane.b32.xlu1 %v170_v29, %s299_s1 }
 0x248   :  { %v174_v31 = vpop.permute.xlu1 %173 }
 0x249   :  { %176 = vst.msk [vmem:[#allocation2] sm:$0xff] %vm50_vm2, %v174_v31 }
 0x24a   :  { %264 = shalt.err (!%p261_p4)
}
 0x24b   :  { %191 = dma.vmem_to_hbm [thread:$0]  %s189_s13, 128, %s379_s6, [#allocation3]  }
 0x24c   :  { %v179_v32 = vpop.permute.xlu1 %178  ;;  %s273_s18 = scalar_lea.vmem %s199_s15, 128  ;;  %p278_p6 = scmp.lt.s32.totalorder %s199_s15, %s199_s15 }
 0x24d   :  { %181 = vst.msk [vmem:[#allocation4] sm:$0xff] %vm50_vm2, %v179_v32  ;;  %p274_p5 = scmp.ne.s32.totalorder %s199_s15, %s273_s18  ;;  %p279_p7 = scmp.lt.s32.totalorder %s273_s18, %s273_s18 }
 0x24f   :  { %p280_p8 = por %p279_p7, %p278_p6 }
 0x251   :  { %p281_p9 = pnand %p280_p8, %p274_p5 }
 0x253   :  { %284 = shalt.err (!%p281_p9)
}
 0x254   :  { %201 = dma.vmem_to_hbm [thread:$0]  %s199_s15, 128, %s380_s7, [#allocation5]  }
 0x255   :  { %293 = dma.done.wait [#allocation3], 128  }
 0x256   :  { %294 = vsyncadd [#allocation3], 4294967168 }
 0x257   :  { %295 = dma.done.wait [#allocation5], 128  }
 0x258   :  { %296 = vsyncadd [#allocation5], 4294967168 }
 0x259   :  { %208 = vsyncpa [#allocation3], 1 }
 0x25a   :  { %209 = vsyncpa [#allocation5], 1 }

</bundles_post_ra>
